<compile_context>
chip_gen: v7x
topology: tpu7x:2x2x1
jax: 0.10.0
libtpu: 0.0.40
codegen_flags: <defaults>
</compile_context>

<pallas_src>
import jax
import jax.numpy as jnp
from jax import lax
from jax.experimental import pallas as pl
from jax.experimental.pallas import tpu as pltpu


def _rnn_head_kernel(x_ref,        # (S, I)    input sequence
                     wih_ref,      # (I, 2H)   [W_ih_f^T | W_ih_b^T]
                     whh_ref,      # (2H, 2H)  block-diag(W_hh_f^T, W_hh_b^T)
                     b_ref,        # (1, 2H)   [b_ih_f+b_hh_f | b_ih_b+b_hh_b]
                     h0_ref,       # (1, 2H)   packed initial hidden [h_f | h_b]
                     wout_ref,     # (2H, O)   Linear weight^T
                     bout_ref,     # (1, O)    Linear bias
                     out_ref,      # (1, O)    log-softmax output
                     hfinal_ref):  # (1, 2H)   packed final hidden [h_f | h_b]
    S = x_ref.shape[0]
    H2 = whh_ref.shape[0]
    H = H2 // 2

    # Hoist all weight/bias loads out of the recurrence.
    whh = whh_ref[...]
    bias = b_ref[...]

    # Input projections for BOTH directions in one well-shaped MXU matmul,
    # with the biases fused in.  xp[t] = [x[t]@Wih_f^T + b_f | x[t]@Wih_b^T + b_b]
    xp = jnp.dot(x_ref[...], wih_ref[...],
                 preferred_element_type=jnp.float32) + bias        # (S, 2H)

    # Lane mask selecting the forward half (first H lanes) of the packed row.
    lane = lax.broadcasted_iota(jnp.int32, (1, H2), 1)
    is_fwd = lane < H

    # Fused bidirectional recurrence: one (1,2H)x(2H,2H) matmul + one tanh per
    # step.  Static unroll (S is small and fixed) so the whole serial chain is
    # visible to the scheduler.
    h = h0_ref[...]                                                # (1, 2H)
    for t in range(S):
        # Forward half consumes xp[t], backward half consumes xp[S-1-t]
        # (backward direction walks the sequence in reverse).
        row = jnp.where(is_fwd, xp[t:t + 1, :], xp[S - 1 - t:S - t, :])
        h = jnp.tanh(
            jnp.dot(h, whh, preferred_element_type=jnp.float32) + row)

    hfinal_ref[...] = h

    # Output head: Linear(cat(h_fwd, h_bwd)) followed by LogSoftmax(dim=1).
    # (Dropout is identity in eval mode.)
    logits = (jnp.dot(h, wout_ref[...], preferred_element_type=jnp.float32)
              + bout_ref[...])                                     # (1, O)
    m = jnp.max(logits, axis=1, keepdims=True)
    z = logits - m
    lse = jnp.log(jnp.sum(jnp.exp(z), axis=1, keepdims=True))
    out_ref[...] = z - lse


def pack_params(params):
    """One-time parameter packing (do NOT call per forward step)."""
    H = params["whh_f"].shape[0]
    O = params["bout"].shape[0]
    f32 = jnp.float32

    wih = jnp.concatenate([params["wih_f"].T, params["wih_b"].T], axis=1)  # (I, 2H)
    zeros = jnp.zeros((H, H), f32)
    whh = jnp.block([[params["whh_f"].T, zeros],
                     [zeros, params["whh_b"].T]])                          # (2H, 2H)
    bias = jnp.concatenate(
        [params["bih_f"] + params["bhh_f"],
         params["bih_b"] + params["bhh_b"]]).reshape(1, 2 * H)             # (1, 2H)
    wout = params["wout"].T                                                # (2H, O)
    bout = params["bout"].reshape(1, O)                                    # (1, O)
    return dict(wih=wih.astype(f32), whh=whh.astype(f32), bias=bias.astype(f32),
                wout=wout.astype(f32), bout=bout.astype(f32))


@jax.jit
def rnn_forward(x, hidden, packed):
    """x: (S, I) f32; hidden: (2, 1, H) f32 (PyTorch h_n layout).

    Returns (output (1, O) log-probs, hidden (2, 1, H))."""
    S, I = x.shape
    H2 = packed["whh"].shape[0]
    H = H2 // 2
    O = packed["bout"].shape[1]

    h0 = hidden.reshape(1, H2)        # (2,1,H) -> [h_f | h_b] packed row

    flops = (2 * S * I * H2           # input projections
             + 2 * S * H2 * H2        # recurrence
             + 2 * H2 * O)            # output head
    transcendentals = S * H2 + O      # tanh per step + exp in softmax
    bytes_accessed = 4 * (S * I + I * H2 + H2 * H2 + 3 * H2 + H2 * O + 2 * O)

    vmem = pl.BlockSpec(memory_space=pltpu.MemorySpace.VMEM)
    out, h_final = pl.pallas_call(
        _rnn_head_kernel,
        out_shape=(
            jax.ShapeDtypeStruct((1, O), jnp.float32),
            jax.ShapeDtypeStruct((1, H2), jnp.float32),
        ),
        in_specs=[vmem] * 7,
        out_specs=(vmem, vmem),
        cost_estimate=pl.CostEstimate(flops=flops,
                                      transcendentals=transcendentals,
                                      bytes_accessed=bytes_accessed),
    )(x, packed["wih"], packed["whh"], packed["bias"], h0,
      packed["wout"], packed["bout"])

    return out, h_final.reshape(2, 1, H)


def _reference_forward(x, hidden, params):
    """Pure-JAX reference mirroring the PyTorch semantics."""
    S, _ = x.shape
    h_f = hidden[0]                   # (1, H)
    h_b = hidden[1]                   # (1, H)
    for t in range(S):
        h_f = jnp.tanh(x[t:t + 1] @ params["wih_f"].T + params["bih_f"]
                       + h_f @ params["whh_f"].T + params["bhh_f"])
        tb = S - 1 - t
        h_b = jnp.tanh(x[tb:tb + 1] @ params["wih_b"].T + params["bih_b"]
                       + h_b @ params["whh_b"].T + params["bhh_b"])
    h_cat = jnp.concatenate([h_f, h_b], axis=1)            # (1, 2H)
    logits = h_cat @ params["wout"].T + params["bout"]
    out = jax.nn.log_softmax(logits, axis=1)
    return out, jnp.stack([h_f, h_b], axis=0)


if __name__ == "__main__":
    # Module hyper-parameters (num_layers=1, as required by init_hidden()).
    input_size, hidden_size, output_size = 8, 32, 16
    seq_len = 8

    key = jax.random.PRNGKey(0)
    ks = jax.random.split(key, 12)
    s_rnn = 1.0 / jnp.sqrt(hidden_size)
    s_out = 1.0 / jnp.sqrt(2 * hidden_size)

    def u(k, shape, s):
        return jax.random.uniform(k, shape, jnp.float32, minval=-s, maxval=s)

    params = dict(
        wih_f=u(ks[0], (hidden_size, input_size), s_rnn),
        whh_f=u(ks[1], (hidden_size, hidden_size), s_rnn),
        bih_f=u(ks[2], (hidden_size,), s_rnn),
        bhh_f=u(ks[3], (hidden_size,), s_rnn),
        wih_b=u(ks[4], (hidden_size, input_size), s_rnn),
        whh_b=u(ks[5], (hidden_size, hidden_size), s_rnn),
        bih_b=u(ks[6], (hidden_size,), s_rnn),
        bhh_b=u(ks[7], (hidden_size,), s_rnn),
        wout=u(ks[8], (output_size, 2 * hidden_size), s_out),
        bout=u(ks[9], (output_size,), s_out),
    )

    # One-time parameter packing (init-time, not per call).
    packed = pack_params(params)

    x = jax.random.normal(ks[10], (seq_len, input_size), jnp.float32)
    hidden0 = jnp.zeros((2, 1, hidden_size), jnp.float32)   # init_hidden()

    out, h_final = rnn_forward(x, hidden0, packed)
    out = jax.block_until_ready(out)
    h_final = jax.block_until_ready(h_final)

    out_ref, h_ref = _reference_forward(x, hidden0, params)
    assert out.shape == (1, output_size)
    assert h_final.shape == (2, 1, hidden_size)
    assert jnp.allclose(out, out_ref, atol=1e-4, rtol=1e-4)
    assert jnp.allclose(h_final, h_ref, atol=1e-4, rtol=1e-4)

    print("KERNEL_OK")
</pallas_src>

<mosaic_0001>
module attributes {stable_mosaic.version = 11 : i64} {
  func.func @_rnn_head_kernel(%arg0: memref<8x8xf32, #tpu.memory_space<vmem>>, %arg1: memref<8x64xf32, #tpu.memory_space<vmem>>, %arg2: memref<64x64xf32, #tpu.memory_space<vmem>>, %arg3: memref<1x64xf32, #tpu.memory_space<vmem>>, %arg4: memref<1x64xf32, #tpu.memory_space<vmem>>, %arg5: memref<64x16xf32, #tpu.memory_space<vmem>>, %arg6: memref<1x16xf32, #tpu.memory_space<vmem>>, %arg7: memref<1x16xf32, #tpu.memory_space<vmem>>, %arg8: memref<1x64xf32, #tpu.memory_space<vmem>>) attributes {dimension_semantics = [], scalar_prefetch = 0 : i64, scratch_operands = 0 : i64, tpu.core_type = #tpu.core_type<tc>} {
    %c0 = arith.constant 0 : index
    %c0_0 = arith.constant 0 : index
    %0 = vector.load %arg2[%c0, %c0_0] : memref<64x64xf32, #tpu.memory_space<vmem>>, vector<64x64xf32>
    %c0_1 = arith.constant 0 : index
    %c0_2 = arith.constant 0 : index
    %1 = vector.load %arg3[%c0_1, %c0_2] : memref<1x64xf32, #tpu.memory_space<vmem>>, vector<1x64xf32>
    %c0_3 = arith.constant 0 : index
    %c0_4 = arith.constant 0 : index
    %2 = vector.load %arg0[%c0_3, %c0_4] : memref<8x8xf32, #tpu.memory_space<vmem>>, vector<8x8xf32>
    %c0_5 = arith.constant 0 : index
    %c0_6 = arith.constant 0 : index
    %3 = vector.load %arg1[%c0_5, %c0_6] : memref<8x64xf32, #tpu.memory_space<vmem>>, vector<8x64xf32>
    %cst = arith.constant dense<0.000000e+00> : vector<8x64xf32>
    %4 = tpu.matmul %2, %3, %cst {dimension_numbers = #tpu.dot_dimension_numbers<[1], [0], [0], [1], [0, 0, 1, 1], [], []>} : vector<8x8xf32>, vector<8x64xf32>, vector<8x64xf32> -> vector<8x64xf32>
    %5 = vector.broadcast %1 : vector<1x64xf32> to vector<8x64xf32>
    %6 = arith.addf %4, %5 : vector<8x64xf32>
    %7 = tpu.iota {dimensions = array<i32: 1>} : vector<1x64xi32>
    %c32_i32 = arith.constant 32 : i32
    %8 = vector.broadcast %c32_i32 : i32 to vector<1x64xi32>
    %9 = arith.cmpi slt, %7, %8 : vector<1x64xi32>
    %c0_7 = arith.constant 0 : index
    %c0_8 = arith.constant 0 : index
    %10 = vector.load %arg4[%c0_7, %c0_8] : memref<1x64xf32, #tpu.memory_space<vmem>>, vector<1x64xf32>
    %11 = vector.extract_strided_slice %6 {offsets = [0, 0], sizes = [1, 64], strides = [1, 1]} : vector<8x64xf32> to vector<1x64xf32>
    %12 = vector.extract_strided_slice %6 {offsets = [7, 0], sizes = [1, 64], strides = [1, 1]} : vector<8x64xf32> to vector<1x64xf32>
    %13 = arith.select %9, %11, %12 : vector<1x64xi1>, vector<1x64xf32>
    %cst_9 = arith.constant dense<0.000000e+00> : vector<1x64xf32>
    %14 = tpu.matmul %10, %0, %cst_9 {dimension_numbers = #tpu.dot_dimension_numbers<[1], [0], [0], [1], [0, 0, 1, 1], [], []>} : vector<1x64xf32>, vector<64x64xf32>, vector<1x64xf32> -> vector<1x64xf32>
    %15 = arith.addf %14, %13 : vector<1x64xf32>
    %16 = math.tanh %15 : vector<1x64xf32>
    %17 = vector.extract_strided_slice %6 {offsets = [1, 0], sizes = [1, 64], strides = [1, 1]} : vector<8x64xf32> to vector<1x64xf32>
    %18 = vector.extract_strided_slice %6 {offsets = [6, 0], sizes = [1, 64], strides = [1, 1]} : vector<8x64xf32> to vector<1x64xf32>
    %19 = arith.select %9, %17, %18 : vector<1x64xi1>, vector<1x64xf32>
    %cst_10 = arith.constant dense<0.000000e+00> : vector<1x64xf32>
    %20 = tpu.matmul %16, %0, %cst_10 {dimension_numbers = #tpu.dot_dimension_numbers<[1], [0], [0], [1], [0, 0, 1, 1], [], []>} : vector<1x64xf32>, vector<64x64xf32>, vector<1x64xf32> -> vector<1x64xf32>
    %21 = arith.addf %20, %19 : vector<1x64xf32>
    %22 = math.tanh %21 : vector<1x64xf32>
    %23 = vector.extract_strided_slice %6 {offsets = [2, 0], sizes = [1, 64], strides = [1, 1]} : vector<8x64xf32> to vector<1x64xf32>
    %24 = vector.extract_strided_slice %6 {offsets = [5, 0], sizes = [1, 64], strides = [1, 1]} : vector<8x64xf32> to vector<1x64xf32>
    %25 = arith.select %9, %23, %24 : vector<1x64xi1>, vector<1x64xf32>
    %cst_11 = arith.constant dense<0.000000e+00> : vector<1x64xf32>
    %26 = tpu.matmul %22, %0, %cst_11 {dimension_numbers = #tpu.dot_dimension_numbers<[1], [0], [0], [1], [0, 0, 1, 1], [], []>} : vector<1x64xf32>, vector<64x64xf32>, vector<1x64xf32> -> vector<1x64xf32>
    %27 = arith.addf %26, %25 : vector<1x64xf32>
    %28 = math.tanh %27 : vector<1x64xf32>
    %29 = vector.extract_strided_slice %6 {offsets = [3, 0], sizes = [1, 64], strides = [1, 1]} : vector<8x64xf32> to vector<1x64xf32>
    %30 = vector.extract_strided_slice %6 {offsets = [4, 0], sizes = [1, 64], strides = [1, 1]} : vector<8x64xf32> to vector<1x64xf32>
    %31 = arith.select %9, %29, %30 : vector<1x64xi1>, vector<1x64xf32>
    %cst_12 = arith.constant dense<0.000000e+00> : vector<1x64xf32>
    %32 = tpu.matmul %28, %0, %cst_12 {dimension_numbers = #tpu.dot_dimension_numbers<[1], [0], [0], [1], [0, 0, 1, 1], [], []>} : vector<1x64xf32>, vector<64x64xf32>, vector<1x64xf32> -> vector<1x64xf32>
    %33 = arith.addf %32, %31 : vector<1x64xf32>
    %34 = math.tanh %33 : vector<1x64xf32>
    %35 = vector.extract_strided_slice %6 {offsets = [4, 0], sizes = [1, 64], strides = [1, 1]} : vector<8x64xf32> to vector<1x64xf32>
    %36 = vector.extract_strided_slice %6 {offsets = [3, 0], sizes = [1, 64], strides = [1, 1]} : vector<8x64xf32> to vector<1x64xf32>
    %37 = arith.select %9, %35, %36 : vector<1x64xi1>, vector<1x64xf32>
    %cst_13 = arith.constant dense<0.000000e+00> : vector<1x64xf32>
    %38 = tpu.matmul %34, %0, %cst_13 {dimension_numbers = #tpu.dot_dimension_numbers<[1], [0], [0], [1], [0, 0, 1, 1], [], []>} : vector<1x64xf32>, vector<64x64xf32>, vector<1x64xf32> -> vector<1x64xf32>
    %39 = arith.addf %38, %37 : vector<1x64xf32>
    %40 = math.tanh %39 : vector<1x64xf32>
    %41 = vector.extract_strided_slice %6 {offsets = [5, 0], sizes = [1, 64], strides = [1, 1]} : vector<8x64xf32> to vector<1x64xf32>
    %42 = vector.extract_strided_slice %6 {offsets = [2, 0], sizes = [1, 64], strides = [1, 1]} : vector<8x64xf32> to vector<1x64xf32>
    %43 = arith.select %9, %41, %42 : vector<1x64xi1>, vector<1x64xf32>
    %cst_14 = arith.constant dense<0.000000e+00> : vector<1x64xf32>
    %44 = tpu.matmul %40, %0, %cst_14 {dimension_numbers = #tpu.dot_dimension_numbers<[1], [0], [0], [1], [0, 0, 1, 1], [], []>} : vector<1x64xf32>, vector<64x64xf32>, vector<1x64xf32> -> vector<1x64xf32>
    %45 = arith.addf %44, %43 : vector<1x64xf32>
    %46 = math.tanh %45 : vector<1x64xf32>
    %47 = vector.extract_strided_slice %6 {offsets = [6, 0], sizes = [1, 64], strides = [1, 1]} : vector<8x64xf32> to vector<1x64xf32>
    %48 = vector.extract_strided_slice %6 {offsets = [1, 0], sizes = [1, 64], strides = [1, 1]} : vector<8x64xf32> to vector<1x64xf32>
    %49 = arith.select %9, %47, %48 : vector<1x64xi1>, vector<1x64xf32>
    %cst_15 = arith.constant dense<0.000000e+00> : vector<1x64xf32>
    %50 = tpu.matmul %46, %0, %cst_15 {dimension_numbers = #tpu.dot_dimension_numbers<[1], [0], [0], [1], [0, 0, 1, 1], [], []>} : vector<1x64xf32>, vector<64x64xf32>, vector<1x64xf32> -> vector<1x64xf32>
    %51 = arith.addf %50, %49 : vector<1x64xf32>
    %52 = math.tanh %51 : vector<1x64xf32>
    %53 = vector.extract_strided_slice %6 {offsets = [7, 0], sizes = [1, 64], strides = [1, 1]} : vector<8x64xf32> to vector<1x64xf32>
    %54 = vector.extract_strided_slice %6 {offsets = [0, 0], sizes = [1, 64], strides = [1, 1]} : vector<8x64xf32> to vector<1x64xf32>
    %55 = arith.select %9, %53, %54 : vector<1x64xi1>, vector<1x64xf32>
    %cst_16 = arith.constant dense<0.000000e+00> : vector<1x64xf32>
    %56 = tpu.matmul %52, %0, %cst_16 {dimension_numbers = #tpu.dot_dimension_numbers<[1], [0], [0], [1], [0, 0, 1, 1], [], []>} : vector<1x64xf32>, vector<64x64xf32>, vector<1x64xf32> -> vector<1x64xf32>
    %57 = arith.addf %56, %55 : vector<1x64xf32>
    %58 = math.tanh %57 : vector<1x64xf32>
    %c0_17 = arith.constant 0 : index
    %c0_18 = arith.constant 0 : index
    %59 = vector.load %arg8[%c0_17, %c0_18] : memref<1x64xf32, #tpu.memory_space<vmem>>, vector<1x64xf32>
    tpu.vector_store %arg8[%c0_17, %c0_18], %58 {strides = array<i32>} : memref<1x64xf32, #tpu.memory_space<vmem>>, vector<1x64xf32>,
    %c0_19 = arith.constant 0 : index
    %c0_20 = arith.constant 0 : index
    %60 = vector.load %arg5[%c0_19, %c0_20] : memref<64x16xf32, #tpu.memory_space<vmem>>, vector<64x16xf32>
    %cst_21 = arith.constant dense<0.000000e+00> : vector<1x16xf32>
    %61 = tpu.matmul %58, %60, %cst_21 {dimension_numbers = #tpu.dot_dimension_numbers<[1], [0], [0], [1], [0, 0, 1, 1], [], []>} : vector<1x64xf32>, vector<64x16xf32>, vector<1x16xf32> -> vector<1x16xf32>
    %c0_22 = arith.constant 0 : index
    %c0_23 = arith.constant 0 : index
    %62 = vector.load %arg6[%c0_22, %c0_23] : memref<1x16xf32, #tpu.memory_space<vmem>>, vector<1x16xf32>
    %63 = arith.addf %61, %62 : vector<1x16xf32>
    %cst_24 = arith.constant dense<0xFF800000> : vector<1xf32>
    %64 = vector.multi_reduction <maximumf>, %63, %cst_24 [1] : vector<1x16xf32> to vector<1xf32>
    %65 = vector.shape_cast %64 : vector<1xf32> to vector<1x1xf32>
    %66 = vector.broadcast %65 : vector<1x1xf32> to vector<1x16xf32>
    %67 = arith.subf %63, %66 : vector<1x16xf32>
    %68 = math.exp %67 : vector<1x16xf32>
    %cst_25 = arith.constant dense<0.000000e+00> : vector<1xf32>
    %69 = vector.multi_reduction <add>, %68, %cst_25 [1] : vector<1x16xf32> to vector<1xf32>
    %70 = vector.shape_cast %69 : vector<1xf32> to vector<1x1xf32>
    %71 = math.log %70 : vector<1x1xf32>
    %72 = vector.broadcast %71 : vector<1x1xf32> to vector<1x16xf32>
    %73 = arith.subf %67, %72 : vector<1x16xf32>
    %c0_26 = arith.constant 0 : index
    %c0_27 = arith.constant 0 : index
    %74 = vector.load %arg7[%c0_26, %c0_27] : memref<1x16xf32, #tpu.memory_space<vmem>>, vector<1x16xf32>
    tpu.vector_store %arg7[%c0_26, %c0_27], %73 {strides = array<i32>} : memref<1x16xf32, #tpu.memory_space<vmem>>, vector<1x16xf32>,
    return
  }
}

</mosaic_0001>

<bundles_post_ra>
// kernel: rnn_forward.1
= control target key start
LH: loop header
LB: loop body
LE: loop exit
PB: predicated region body
PF: predicated region fallthrough
CT: control target
= control target key end

     0   :  { %v1290_v3 = vmov 0.0|0.0   ;;  %v1291_v6 = vmov 0.0   ;;  %vm46_vm0 = vcmask 64512   ;;  %vm1292_vm1 = vmmov 0   ;;  %s1542_s0 = inlined_call_operand.vmem [shape: f32[8,8], index: 0, kind: input, shape index: {}]   ;;  %s1543_s1 = inlined_call_operand.vmem [shape: f32[8,64], index: 1, kind: input, shape index: {}]   ;;  %s1544_s2 = inlined_call_operand.vmem [shape: f32[64,64], index: 2, kind: input, shape index: {}]   ;;  %s1545_s3 = inlined_call_operand.vmem [shape: f32[1,64], index: 3, kind: input, shape index: {}]   ;;  %s1546_s4 = inlined_call_operand.vmem [shape: f32[1,64], index: 4, kind: input, shape index: {}]   ;;  %s1547_s5 = inlined_call_operand.vmem [shape: f32[64,16], index: 5, kind: input, shape index: {}]   ;;  %s1548_s6 = inlined_call_operand.vmem [shape: f32[1,16], index: 6, kind: input, shape index: {}]   ;;  %s1549_s7 = inlined_call_operand.hbm [shape: f32[1,16], index: 7, kind: output, shape index: {0}]   ;;  %s1550_s8 = inlined_call_operand.vmem [shape: f32[1,64], index: 8, kind: output, shape index: {1}]  }
   0x1   :  { %v29_v0 = vld [vmem:[%s1544_s2] sm:$0xff]  ;;  %v30_v1 = vld [vmem:[%s1544_s2 + $0x8] sm:$0xff]  ;;  %v31_v2 = vld [vmem:[%s1544_s2 + $0x10] sm:$0xff]  ;;  %1134 = vmatprep.subr.bf16.mxu1 %v1290_v3  ;;  %958 = vmatprep.subr.mxu0 %v1291_v6 }
   0x2   :  { %v1349_v4 = vpack.c.bf16 %v30_v1, %v29_v0  ;;  %v32_v5 = vld [vmem:[%s1544_s2 + $0x18] sm:$0xff]  ;;  %v39_v7 = vld [vmem:[%s1543_s1] sm:$0xff]  ;;  %960 = vmatprep.mubr.msk.f32.mxu0 %vm1292_vm1, %v1291_v6  ;;  %v34_v11 = vld [vmem:[%s1544_s2 + $0x28] sm:$0xff]  ;;  %979 = vmatprep.mubr.msk.f32.mxu1 %vm1292_vm1, %v1291_v6 }
   0x3   :  { %v38_v8 = vld [vmem:[%s1542_s0] sm:$0xff]  ;;  %959 = vmatpush3.msra.mxu0 %v39_v7  ;;  %v1364_v9 = vpack.c.bf16 %v32_v5, %v31_v2 }
   0x4   :  { %1136 = vmatpush3.bf16.msra.mxu1 %v1349_v4  ;;  %961 = vmatmul.mubr.msk.f32.vlgmr.msra.gmra.mrb[0].mxu0 %vm46_vm0, %v38_v8  ;;  %v33_v10 = vld [vmem:[%s1544_s2 + $0x20] sm:$0xff] }
   0x5   :  { %1137 = vmatprep.subr.bf16.mxu1 %v1290_v3 }
   0x6   :  { %14 = vsyncpa [#allocation3], 0  ;;  %1146 = vmatprep.subr.bf16.mxu0 %v1290_v3  ;;  %998 = vmatprep.mubr.msk.f32.mxu0 %vm1292_vm1, %v1291_v6  ;;  %v1380_v12 = vpack.c.bf16 %v34_v11, %v33_v10  ;;  %v35_v13 = vld [vmem:[%s1544_s2 + $0x30] sm:$0xff]  ;;  %v36_v14 = vld [vmem:[%s1544_s2 + $0x38] sm:$0xff]  ;;  %vm128_vm2 = vcmask 523264   ;;  %v120_v17 = vlaneseq  ;;  %vm748_vm4 = vcmask 516096  }
   0x7   :  { %1148 = vmatpush3.bf16.msra.mxu0 %v1349_v4  ;;  %v1392_v15 = vpack.c.bf16 %v36_v14, %v35_v13  ;;  %v123_v16 = vld [vmem:[%s1546_s4] sm:$0x1]  ;;  %v751_v61 = vld [vmem:[%s1547_s5 + $0x8] sm:$0xff]  ;;  %v752_v5 = vld [vmem:[%s1547_s5 + $0x10] sm:$0xff]  ;;  %vm832_vm5 = vcmask 122880  }
   0x8   :  { %1139 = vmatpush3.bf16.msra.mxu1 %v1364_v9  ;;  %1149 = vmatprep.subr.bf16.mxu0 %v1290_v3  ;;  %v864_v18 = vld [vmem:[%s1545_s3] ss:$0 sm:$0xff]  ;;  %v121_v19 = vand.u32 127, %v120_v17  ;;  %v756_v11 = vld [vmem:[%s1547_s5 + $0x30] sm:$0xff] }
   0x9   :  { %1140 = vmatprep.subr.bf16.mxu1 %v1290_v3  ;;  %v750_v60 = vld [vmem:[%s1547_s5] sm:$0xff] }
   0xa   :  { %vm122_vm3 = vcmp.lt.s32.totalorder %v121_v19, 32  ;;  %v1231_v62 = vpack.c.bf16 %v751_v61, %v750_v60  ;;  %v754_v8 = vld [vmem:[%s1547_s5 + $0x20] sm:$0xff] }
   0xb   :  { %1151 = vmatpush3.bf16.msra.mxu0 %v1364_v9 }
   0xc   :  { %1142 = vmatpush3.bf16.msra.mxu1 %v1380_v12  ;;  %1152 = vmatprep.subr.bf16.mxu0 %v1290_v3 }
   0xd   :  { %1143 = vmatprep.subr.bf16.mxu1 %v1290_v3 }
   0xf   :  { %1154 = vmatpush3.bf16.msra.mxu0 %v1380_v12 }
  0x10   :  { %1145 = vmatpush3.bf16.msra.mxu1 %v1392_v15  ;;  %1155 = vmatprep.subr.bf16.mxu0 %v1290_v3 }
  0x11   :  { %1158 = vmatprep.subr.bf16.mxu1 %v1290_v3 }
  0x13   :  { %980 = vmatmul.mubr.msk.f32.vlgmr.msra.gmra.mrb[0].mxu1 %vm128_vm2, %v123_v16  ;;  %1157 = vmatpush3.bf16.msra.mxu0 %v1392_v15 }
  0x14   :  { %1160 = vmatpush3.bf16.msra.mxu1 %v1349_v4  ;;  %1017 = vmatprep.mubr.msk.f32.mxu1 %vm1292_vm1, %v1291_v6 }
  0x15   :  { %1161 = vmatprep.subr.bf16.mxu1 %v1290_v3  ;;  %1170 = vmatprep.subr.bf16.mxu0 %v1290_v3 }
  0x18   :  { %1163 = vmatpush3.bf16.msra.mxu1 %v1364_v9 }
  0x19   :  { %1164 = vmatprep.subr.bf16.mxu1 %v1290_v3 }
  0x1c   :  { %1166 = vmatpush3.bf16.msra.mxu1 %v1380_v12 }
  0x1d   :  { %1167 = vmatprep.subr.bf16.mxu1 %v1290_v3 }
  0x20   :  { %1169 = vmatpush3.bf16.msra.mxu1 %v1392_v15 }
  0x21   :  { %1182 = vmatprep.subr.bf16.mxu1 %v1290_v3 }
  0xd7   :  { %v116_v20 = vpop.f32.mrb[0].mxu0 }
  0xd8   :  { %v117_v21 = vadd.f32 %v864_v18, %v116_v20  ;;  %v962_v22 = vpop.f32.mrb[1].mxu0 }
  0xda   :  { %v203_v23 = vrot.slane %v117_v21, 5  ;;  %v283_v24 = vrot.slane %v117_v21, 3  ;;  %v363_v25 = vrot.slane %v117_v21, 1  ;;  %v125_v29 = vrot.slane %v117_v21, 7 }
  0xdc   :  { %v1419_v26 = vsel %vm122_vm3, %v117_v21, %v203_v23  ;;  %v1421_v27 = vsel %vm122_vm3, %v117_v21, %v283_v24  ;;  %v1423_v28 = vsel %vm122_vm3, %v117_v21, %v363_v25  ;;  %v1425_v30 = vsel %vm122_vm3, %v117_v21, %v125_v29 }
  0xdd   :  { %v207_v35 = vrot.slane %v1419_v26, 1  ;;  %v287_v40 = vrot.slane %v1421_v27, 2  ;;  %v367_v45 = vrot.slane %v1423_v28, 3  ;;  %v444_v50 = vrot.slane %v1425_v30, 4 }
  0xde   :  { %v520_v55 = vrot.slane %v1419_v26, 5  ;;  %v596_v63 = vrot.slane %v1421_v27, 6  ;;  %v672_v14 = vrot.slane %v1423_v28, 7 }
  0xe6   :  { %v198_v31 = vpop.f32.mrb[0].mxu1 }
  0xe7   :  { %v199_v32 = vadd.f32 %v198_v31, %v1425_v30  ;;  %v981_v33 = vpop.f32.mrb[1].mxu1 }
  0xe9   :  { %1246 = vtanh.f32 %v199_v32 }
  0xf3   :  { %v1247_v34 = vpop.eup %1246 }
  0xf4   :  { %999 = vmatmul.mubr.msk.f32.vlgmr.msra.gmra.mrb[2].mxu0 %vm128_vm2, %v1247_v34 }
  0xf5   :  { %1172 = vmatpush3.bf16.msra.mxu0 %v1349_v4  ;;  %1036 = vmatprep.mubr.msk.f32.mxu0 %vm1292_vm1, %v1291_v6 }
  0xf6   :  { %1173 = vmatprep.subr.bf16.mxu0 %v1290_v3 }
  0xf9   :  { %1175 = vmatpush3.bf16.msra.mxu0 %v1364_v9 }
  0xfa   :  { %1176 = vmatprep.subr.bf16.mxu0 %v1290_v3 }
  0xfd   :  { %1178 = vmatpush3.bf16.msra.mxu0 %v1380_v12 }
  0xfe   :  { %1179 = vmatprep.subr.bf16.mxu0 %v1290_v3 }
 0x101   :  { %1181 = vmatpush3.bf16.msra.mxu0 %v1392_v15 }
 0x102   :  { %1194 = vmatprep.subr.bf16.mxu0 %v1290_v3 }
 0x1c7   :  { %v278_v36 = vpop.f32.mrb[2].mxu0 }
 0x1c8   :  { %v279_v37 = vadd.f32 %v278_v36, %v207_v35  ;;  %v1000_v38 = vpop.f32.mrb[3].mxu0 }
 0x1ca   :  { %1248 = vtanh.f32 %v279_v37 }
 0x1d4   :  { %v1249_v39 = vpop.eup %1248 }
 0x1d5   :  { %1018 = vmatmul.mubr.msk.f32.vlgmr.msra.gmra.mrb[2].mxu1 %vm128_vm2, %v1249_v39 }
 0x1d6   :  { %1184 = vmatpush3.bf16.msra.mxu1 %v1349_v4  ;;  %1055 = vmatprep.mubr.msk.f32.mxu1 %vm1292_vm1, %v1291_v6 }
 0x1d7   :  { %1185 = vmatprep.subr.bf16.mxu1 %v1290_v3 }
 0x1da   :  { %1187 = vmatpush3.bf16.msra.mxu1 %v1364_v9 }
 0x1db   :  { %1188 = vmatprep.subr.bf16.mxu1 %v1290_v3 }
 0x1de   :  { %1190 = vmatpush3.bf16.msra.mxu1 %v1380_v12 }
 0x1df   :  { %1191 = vmatprep.subr.bf16.mxu1 %v1290_v3 }
 0x1e2   :  { %1193 = vmatpush3.bf16.msra.mxu1 %v1392_v15 }
 0x1e3   :  { %1206 = vmatprep.subr.bf16.mxu1 %v1290_v3 }
 0x2a8   :  { %v358_v41 = vpop.f32.mrb[2].mxu1 }
 0x2a9   :  { %v359_v42 = vadd.f32 %v358_v41, %v287_v40  ;;  %v1019_v43 = vpop.f32.mrb[3].mxu1 }
 0x2ab   :  { %1250 = vtanh.f32 %v359_v42 }
 0x2b5   :  { %v1251_v44 = vpop.eup %1250 }
 0x2b6   :  { %1037 = vmatmul.mubr.msk.f32.vlgmr.msra.gmra.mrb[4].mxu0 %vm128_vm2, %v1251_v44 }
 0x2b7   :  { %1196 = vmatpush3.bf16.msra.mxu0 %v1349_v4  ;;  %1074 = vmatprep.mubr.msk.f32.mxu0 %vm1292_vm1, %v1291_v6 }
 0x2b8   :  { %1197 = vmatprep.subr.bf16.mxu0 %v1290_v3 }
 0x2bb   :  { %1199 = vmatpush3.bf16.msra.mxu0 %v1364_v9 }
 0x2bc   :  { %1200 = vmatprep.subr.bf16.mxu0 %v1290_v3 }
 0x2bf   :  { %1202 = vmatpush3.bf16.msra.mxu0 %v1380_v12 }
 0x2c0   :  { %1203 = vmatprep.subr.bf16.mxu0 %v1290_v3 }
 0x2c3   :  { %1205 = vmatpush3.bf16.msra.mxu0 %v1392_v15 }
 0x2c4   :  { %1218 = vmatprep.subr.bf16.mxu0 %v1290_v3 }
 0x389   :  { %v438_v46 = vpop.f32.mrb[4].mxu0 }
 0x38a   :  { %v439_v47 = vadd.f32 %v438_v46, %v367_v45  ;;  %v1038_v48 = vpop.f32.mrb[5].mxu0 }
 0x38c   :  { %1252 = vtanh.f32 %v439_v47 }
 0x396   :  { %v1253_v49 = vpop.eup %1252 }
 0x397   :  { %1056 = vmatmul.mubr.msk.f32.vlgmr.msra.gmra.mrb[4].mxu1 %vm128_vm2, %v1253_v49 }
 0x398   :  { %1208 = vmatpush3.bf16.msra.mxu1 %v1349_v4  ;;  %1093 = vmatprep.mubr.msk.f32.mxu1 %vm1292_vm1, %v1291_v6 }
 0x399   :  { %1209 = vmatprep.subr.bf16.mxu1 %v1290_v3 }
 0x39c   :  { %1211 = vmatpush3.bf16.msra.mxu1 %v1364_v9 }
 0x39d   :  { %1212 = vmatprep.subr.bf16.mxu1 %v1290_v3 }
 0x3a0   :  { %1214 = vmatpush3.bf16.msra.mxu1 %v1380_v12 }
 0x3a1   :  { %1215 = vmatprep.subr.bf16.mxu1 %v1290_v3 }
 0x3a4   :  { %1217 = vmatpush3.bf16.msra.mxu1 %v1392_v15 }
 0x3a5   :  { %1230 = vmatprep.subr.bf16.mxu1 %v1290_v3 }
 0x46a   :  { %v515_v51 = vpop.f32.mrb[4].mxu1 }
 0x46b   :  { %v516_v52 = vadd.f32 %v515_v51, %v444_v50  ;;  %v1057_v53 = vpop.f32.mrb[5].mxu1 }
 0x46d   :  { %1254 = vtanh.f32 %v516_v52 }
 0x477   :  { %v1255_v54 = vpop.eup %1254 }
 0x478   :  { %1075 = vmatmul.mubr.msk.f32.vlgmr.msra.gmra.mrb[6].mxu0 %vm128_vm2, %v1255_v54 }
 0x479   :  { %1220 = vmatpush3.bf16.msra.mxu0 %v1349_v4  ;;  %1112 = vmatprep.mubr.msk.f32.mxu0 %vm1292_vm1, %v1291_v6 }
 0x47a   :  { %1221 = vmatprep.subr.bf16.mxu0 %v1290_v3 }
 0x47d   :  { %1223 = vmatpush3.bf16.msra.mxu0 %v1364_v9  ;;  %v755_v9 = vld [vmem:[%s1547_s5 + $0x28] sm:$0xff] }
 0x47e   :  { %1224 = vmatprep.subr.bf16.mxu0 %v1290_v3  ;;  %v1237_v10 = vpack.c.bf16 %v755_v9, %v754_v8 }
 0x481   :  { %1226 = vmatpush3.bf16.msra.mxu0 %v1380_v12  ;;  %v757_v12 = vld [vmem:[%s1547_s5 + $0x38] sm:$0xff] }
 0x482   :  { %1227 = vmatprep.subr.bf16.mxu0 %v1290_v3  ;;  %v1240_v13 = vpack.c.bf16 %v757_v12, %v756_v11 }
 0x485   :  { %1229 = vmatpush3.bf16.msra.mxu0 %v1392_v15 }
 0x54b   :  { %v591_v56 = vpop.f32.mrb[6].mxu0 }
 0x54c   :  { %v592_v57 = vadd.f32 %v591_v56, %v520_v55  ;;  %v1076_v58 = vpop.f32.mrb[7].mxu0 }
 0x54e   :  { %1256 = vtanh.f32 %v592_v57 }
 0x558   :  { %v1257_v59 = vpop.eup %1256 }
 0x559   :  { %1094 = vmatmul.mubr.msk.f32.vlgmr.msra.gmra.mrb[6].mxu1 %vm128_vm2, %v1257_v59 }
 0x55a   :  { %1131 = vmatprep.mubr.msk.f32.mxu1 %vm1292_vm1, %v1291_v6  ;;  %1232 = vmatpush3.bf16.msra.mxu1 %v1231_v62  ;;  %v753_v6 = vld [vmem:[%s1547_s5 + $0x18] sm:$0xff]  ;;  %s1293_s5 = smov [#allocation2]  }
 0x55b   :  { %1233 = vmatprep.subr.bf16.mxu1 %v1290_v3  ;;  %v1234_v7 = vpack.c.bf16 %v753_v6, %v752_v5 }
 0x55e   :  { %1235 = vmatpush3.bf16.msra.mxu1 %v1234_v7 }
 0x55f   :  { %1236 = vmatprep.subr.bf16.mxu1 %v1290_v3 }
 0x562   :  { %1238 = vmatpush3.bf16.msra.mxu1 %v1237_v10 }
 0x563   :  { %1239 = vmatprep.subr.bf16.mxu1 %v1290_v3  ;;  %v758_v3 = vld [vmem:[%s1548_s6] sm:$0x1]  ;;  %s852_s6 = sshll.u32 %s1293_s5, 4  ;;  %s853_s6 = int_to_ptr.vmem [resolvable:$true] %s852_s6 }
 0x564   :  { %s1270_s20 = scalar_lea.vmem %s853_s6, 32  ;;  %p1271_p1 = scmp.lt.s32.totalorder %s853_s6, %s853_s6 }
 0x566   :  { %1241 = vmatpush3.bf16.msra.mxu1 %v1240_v13 }
 0x62c   :  { %v667_v0 = vpop.f32.mrb[6].mxu1 }
 0x62d   :  { %v668_v1 = vadd.f32 %v667_v0, %v596_v63  ;;  %v1095_v2 = vpop.f32.mrb[7].mxu1 }
 0x62f   :  { %1258 = vtanh.f32 %v668_v1 }
 0x639   :  { %v1259_v4 = vpop.eup %1258 }
 0x63a   :  { %1113 = vmatmul.mubr.msk.f32.vlgmr.msra.gmra.mrb[8].mxu0 %vm128_vm2, %v1259_v4 }
 0x70d   :  { %v743_v15 = vpop.f32.mrb[8].mxu0 }
 0x70e   :  { %v744_v16 = vadd.f32 %v743_v15, %v672_v14  ;;  %v1114_v17 = vpop.f32.mrb[9].mxu0 }
 0x710   :  { %1260 = vtanh.f32 %v744_v16 }
 0x71a   :  { %v1261_v18 = vpop.eup %1260 }
 0x71b   :  { %749 = vst.msk [vmem:[%s1550_s8] sm:$0x1] %vm748_vm4, %v1261_v18  ;;  %1132 = vmatmul.mubr.msk.f32.vlgmr.msra.gmra.mrb[8].mxu1 %vm128_vm2, %v1261_v18  ;;  %s1266_s8 = scalar_lea.vmem %s853_s6, 16 }
 0x71c   :  { %p1267_p0 = scmp.ne.s32.totalorder %s853_s6, %s1266_s8  ;;  %p1272_p2 = scmp.lt.s32.totalorder %s1270_s20, %s1266_s8 }
 0x71e   :  { %p1273_p3 = por %p1272_p2, %p1271_p1 }
 0x720   :  { %p1274_p4 = pnand %p1273_p3, %p1267_p0 }
 0x7ee   :  { %v828_v19 = vpop.f32.mrb[8].mxu1 }
 0x7ef   :  { %v829_v20 = vadd.f32 %v828_v19, %v758_v3  ;;  %v1133_v21 = vpop.f32.mrb[9].mxu1 }
 0x7f1   :  { %v833_v22 = vsel %vm832_vm5, %v829_v20, -inf }
 0x7f2   :  { %834 = vmax.xlane.f32.xlu0 %v833_v22 }
 0x87f   :  { %v835_v23 = vpop.xlane.xlu0 %834 }
 0x880   :  { %v836_v24 = vsub.f32 %v829_v20, %v835_v23 }
 0x882   :  { %v837_v25 = vmul.f32 1.442695, %v836_v24 }
 0x884   :  { %1262 = vpow2.f32 %v837_v25 }
 0x88e   :  { %v1263_v26 = vpop.eup %1262 }
 0x88f   :  { %v839_v27 = vsel %vm832_vm5, %v1263_v26, 0.0 }
 0x890   :  { %840 = vadd.xlane.f32.xlu0 %v839_v27 }
 0x91d   :  { %v841_v28 = vpop.xlane.xlu0 %840 }
 0x91e   :  { %1264 = vlog2.f32 %v841_v28 }
 0x928   :  { %v1265_v29 = vpop.eup %1264 }
 0x929   :  { %v843_v30 = vmul.f32 0.6931472, %v1265_v29 }
 0x92b   :  { %v844_v31 = vsub.f32 %v836_v24, %v843_v30 }
 0x92d   :  { %845 = vst.msk [vmem:[#allocation2] sm:$0x1] %vm832_vm5, %v844_v31 }
 0x92e   :  { %1277 = shalt.err (!%p1274_p4)
}
 0x92f   :  { %s1278_s23 = scalar_lea.hbm %s1549_s7, 16 }
 0x930   :  { %p1279_p5 = scmp.ne.s32.totalorder %s1549_s7, %s1278_s23  ;;  %p1282_p6 = scmp.lt.u32.totalorder %s1278_s23, %s1549_s7 }
 0x932   :  { %p1284_p7 = pnand %p1282_p6, %p1279_p5 }
 0x934   :  { %1287 = shalt.err (!%p1284_p7)
}
 0x935   :  { %855 = dma.vmem_to_hbm [thread:$0]  %s853_s6, 16, %s1549_s7, [#allocation3]  }
 0x936   :  { %1288 = dma.done.wait [#allocation3], 16  }
 0x937   :  { %1289 = vsyncadd [#allocation3], 4294967280 }
 0x938   :  { %863 = vsyncpa [#allocation3], 1 }

</bundles_post_ra>
